<compile_context>
chip_gen: v7x
topology: tpu7x:2x2x1
jax: 0.10.0
libtpu: 0.0.40
codegen_flags: <defaults>
</compile_context>

<pallas_src>
import jax
import jax.numpy as jnp
from jax.experimental import pallas as pl
from jax.experimental.pallas import tpu as pltpu


def _clip_loss_kernel(scale_ref, diag_ref, sims_ref, out_ref,
                      col_m_ref, col_s_ref, row_acc_ref):
    # scale_ref: (1,1) f32 SMEM          logit_scale
    # diag_ref:  (1,n) VMEM (resident)   diagonal of sims
    # sims_ref:  (TM,n) VMEM row tile
    # out_ref:   (1,1) f32 SMEM          scalar loss
    # col_m_ref: (1,n) f32 VMEM scratch  running column max
    # col_s_ref: (1,n) f32 VMEM scratch  running sum of exp(x - col_m)
    # row_acc_ref: (1,) f32 SMEM scratch running sum of row LSEs
    i = pl.program_id(0)
    nsteps = pl.num_programs(0)

    @pl.when(i == 0)
    def _init():
        col_m_ref[...] = jnp.full(col_m_ref.shape, -jnp.inf, jnp.float32)
        col_s_ref[...] = jnp.zeros(col_s_ref.shape, jnp.float32)
        row_acc_ref[0] = jnp.float32(0.0)

    scale = jnp.exp(scale_ref[0, 0].astype(jnp.float32))
    # Fused cast -> scale per tile; logits is never a persistent n^2 buffer.
    logits = sims_ref[...].astype(jnp.float32) * scale          # (TM, n) f32

    # --- text->video (row) path: rows are complete within a tile -> exact LSE.
    row_max = jnp.max(logits, axis=1, keepdims=True)             # (TM, 1)
    e_row = jnp.exp(logits - row_max)                            # (TM, n)
    row_lse = row_max + jnp.log(jnp.sum(e_row, axis=1, keepdims=True))
    row_acc_ref[0] += jnp.sum(row_lse)

    # --- video->text (column) path: flash-style online max + rescaled sums.
    tile_col_max = jnp.max(logits, axis=0, keepdims=True)        # (1, n)
    new_m = jnp.maximum(col_m_ref[...], tile_col_max)            # (1, n)
    alpha = jnp.exp(col_m_ref[...] - new_m)                      # (1, n)
    e_col = jnp.exp(logits - new_m)                              # (TM, n)
    col_s_ref[...] = col_s_ref[...] * alpha + jnp.sum(e_col, axis=0,
                                                      keepdims=True)
    col_m_ref[...] = new_m

    @pl.when(i == nsteps - 1)
    def _finalize():
        n = diag_ref.shape[1]
        col_lse_sum = jnp.sum(col_m_ref[...] + jnp.log(col_s_ref[...]))
        trace = scale * jnp.sum(diag_ref[...].astype(jnp.float32))
        out_ref[0, 0] = (row_acc_ref[0] + col_lse_sum - 2.0 * trace) \
            * jnp.float32(0.5 / n)


def _pick_tile(n, itemsize, max_tile_bytes=4 << 20, max_tm=512):
    """Largest row-tile TM that divides n, is a multiple of 8, and keeps one
    (TM, n) tile under ~max_tile_bytes.  Falls back to a single full block."""
    cap = min(max_tm, n, max(8, max_tile_bytes // max(1, n * itemsize)))
    tm = (cap // 8) * 8
    while tm >= 8:
        if n % tm == 0:
            return tm
        tm -= 8
    return n  # no aligned divisor (e.g. small or prime n): single block


def clip_loss(sims, logit_scale, *, tm=None):
    """sims: (n, n) float32/bfloat16, logit_scale: scalar-like -> scalar loss."""
    n = sims.shape[0]
    assert sims.shape == (n, n)
    logit_scale = jnp.asarray(logit_scale, jnp.float32).reshape(1, 1)
    # Diagonal of sims (O(n) gather in XLA); the trace term only needs this.
    diag = jnp.diagonal(sims).reshape(1, n)
    # NOTE: sims is NOT force-cast here; bf16 inputs halve HBM traffic and are
    # upcast to f32 inside the kernel.

    itemsize = jnp.dtype(sims.dtype).itemsize
    if tm is None:
        tm = _pick_tile(n, itemsize)
    assert n % tm == 0 and (tm % 8 == 0 or tm == n), (n, tm)
    grid = (n // tm,)

    # VMEM budget: 2 pipelined input tile buffers + ~3 live f32 (TM, n)
    # temporaries + column accumulators + diag + slack; clamp to 48 MiB so
    # there is headroom on every generation (v7x has only 64 MiB physical).
    needed = (2 * tm * n * itemsize + 3 * tm * n * 4
              + 2 * 8 * n * 4 + n * itemsize + (1 << 20))
    vmem_limit = int(min(max(needed, 16 << 20), 48 << 20))

    out = pl.pallas_call(
        _clip_loss_kernel,
        out_shape=jax.ShapeDtypeStruct((1, 1), jnp.float32),
        grid=grid,
        in_specs=[
            pl.BlockSpec(memory_space=pltpu.SMEM),       # logit_scale (1,1)
            pl.BlockSpec((1, n), lambda i: (0, 0)),      # diag, resident
            pl.BlockSpec((tm, n), lambda i: (i, 0)),     # sims row tile
        ],
        out_specs=pl.BlockSpec(memory_space=pltpu.SMEM),
        scratch_shapes=[
            pltpu.VMEM((1, n), jnp.float32),             # running col max
            pltpu.VMEM((1, n), jnp.float32),             # running col exp-sum
            pltpu.SMEM((1,), jnp.float32),               # running row-LSE sum
        ],
        compiler_params=pltpu.CompilerParams(
            dimension_semantics=("arbitrary",),
            vmem_limit_bytes=vmem_limit,
        ),
    )(logit_scale, diag, sims)
    return out[0, 0]


def _clip_loss_ref(sims, logit_scale):
    """Pure-JAX reference mirroring the PyTorch module."""
    scale = jnp.exp(jnp.asarray(logit_scale, jnp.float32).reshape(()))
    logits = jnp.asarray(sims, jnp.float32) * scale
    t2v = jax.nn.log_softmax(logits, axis=1)
    v2t = jax.nn.log_softmax(logits, axis=0)
    t2v_loss = -jnp.mean(jnp.diag(t2v))
    v2t_loss = -jnp.mean(jnp.diag(v2t))
    return (t2v_loss + v2t_loss) / 2.0


if __name__ == "__main__":
    # Small shapes; tm=64 over n=256 gives a 4-step grid so the init /
    # accumulate / finalize paths and the online column accumulator are all
    # exercised.
    n, tm = 256, 64
    key = jax.random.PRNGKey(0)
    # cosine-similarity-like inputs in [-1, 1]
    sims = jnp.tanh(jax.random.normal(key, (n, n), dtype=jnp.float32))
    logit_scale = jnp.full((1, 1), jnp.log(1.0 / 0.07), dtype=jnp.float32)

    loss = clip_loss(sims, logit_scale, tm=tm)
    jax.block_until_ready(loss)

    ref = _clip_loss_ref(sims, logit_scale)
    assert jnp.allclose(loss, ref, atol=1e-4, rtol=1e-5), (loss, ref)

    print("KERNEL_OK")
</pallas_src>

<mosaic_0001>
module attributes {stable_mosaic.version = 11 : i64} {
  func.func @_clip_loss_kernel(%arg0: i32, %arg1: memref<1x1xf32, #tpu.memory_space<smem>>, %arg2: memref<1x256xf32, #tpu.memory_space<vmem>>, %arg3: memref<64x256xf32, #tpu.memory_space<vmem>>, %arg4: memref<1x1xf32, #tpu.memory_space<smem>>, %arg5: memref<1x256xf32, #tpu.memory_space<vmem>>, %arg6: memref<1x256xf32, #tpu.memory_space<vmem>>, %arg7: memref<1xf32, #tpu.memory_space<smem>>) attributes {dimension_semantics = [#tpu.dimension_semantics<arbitrary>], iteration_bounds = array<i64: 4>, scalar_prefetch = 0 : i64, scratch_operands = 3 : i64, tpu.core_type = #tpu.core_type<tc>, window_params = [{transform_indices = @transform_0, window_bounds = array<i64: 1, 1>}, {pipeline_mode = #tpu.pipeline_mode<synchronous>, transform_indices = @transform_1, window_bounds = array<i64: 1, 256>}, {transform_indices = @transform_2, window_bounds = array<i64: 64, 256>}, {transform_indices = @transform_3, window_bounds = array<i64: 1, 1>}]} {
    %c0_i32 = arith.constant 0 : i32
    %0 = arith.cmpi eq, %arg0, %c0_i32 : i32
    %1 = arith.extui %0 : i1 to i32
    %c0_i32_0 = arith.constant 0 : i32
    %2 = arith.cmpi ne, %1, %c0_i32_0 : i32
    scf.if %2 {
      %cst_21 = arith.constant 0xFF800000 : f32
      %44 = vector.broadcast %cst_21 : f32 to vector<1x256xf32>
      %c0_22 = arith.constant 0 : index
      %c0_23 = arith.constant 0 : index
      %45 = vector.load %arg5[%c0_22, %c0_23] : memref<1x256xf32, #tpu.memory_space<vmem>>, vector<1x256xf32>
      tpu.vector_store %arg5[%c0_22, %c0_23], %44 {strides = array<i32>} : memref<1x256xf32, #tpu.memory_space<vmem>>, vector<1x256xf32>,
      %cst_24 = arith.constant 0.000000e+00 : f32
      %46 = vector.broadcast %cst_24 : f32 to vector<1x256xf32>
      %c0_25 = arith.constant 0 : index
      %c0_26 = arith.constant 0 : index
      %47 = vector.load %arg6[%c0_25, %c0_26] : memref<1x256xf32, #tpu.memory_space<vmem>>, vector<1x256xf32>
      tpu.vector_store %arg6[%c0_25, %c0_26], %46 {strides = array<i32>} : memref<1x256xf32, #tpu.memory_space<vmem>>, vector<1x256xf32>,
      %cst_27 = arith.constant 0.000000e+00 : f32
      %c0_28 = arith.constant 0 : index
      %48 = memref.load %arg7[%c0_28] : memref<1xf32, #tpu.memory_space<smem>>
      memref.store %cst_27, %arg7[%c0_28] : memref<1xf32, #tpu.memory_space<smem>>
    } else {
    }
    %c0 = arith.constant 0 : index
    %c0_1 = arith.constant 0 : index
    %3 = memref.load %arg1[%c0, %c0_1] : memref<1x1xf32, #tpu.memory_space<smem>>
    %4 = math.exp %3 : f32
    %c0_2 = arith.constant 0 : index
    %c0_3 = arith.constant 0 : index
    %5 = vector.load %arg3[%c0_2, %c0_3] : memref<64x256xf32, #tpu.memory_space<vmem>>, vector<64x256xf32>
    %6 = vector.broadcast %4 : f32 to vector<64x256xf32>
    %7 = arith.mulf %5, %6 : vector<64x256xf32>
    %cst = arith.constant dense<0xFF800000> : vector<64xf32>
    %8 = vector.multi_reduction <maximumf>, %7, %cst [1] : vector<64x256xf32> to vector<64xf32>
    %9 = vector.shape_cast %8 : vector<64xf32> to vector<64x1xf32>
    %10 = vector.broadcast %9 : vector<64x1xf32> to vector<64x256xf32>
    %11 = arith.subf %7, %10 : vector<64x256xf32>
    %12 = math.exp %11 : vector<64x256xf32>
    %cst_4 = arith.constant dense<0.000000e+00> : vector<64xf32>
    %13 = vector.multi_reduction <add>, %12, %cst_4 [1] : vector<64x256xf32> to vector<64xf32>
    %14 = vector.shape_cast %13 : vector<64xf32> to vector<64x1xf32>
    %15 = math.log %14 : vector<64x1xf32>
    %16 = arith.addf %9, %15 : vector<64x1xf32>
    %c0_5 = arith.constant 0 : index
    %17 = memref.load %arg7[%c0_5] : memref<1xf32, #tpu.memory_space<smem>>
    %18 = vector.shape_cast %16 : vector<64x1xf32> to vector<1x64x1xf32>
    %cst_6 = arith.constant dense<0.000000e+00> : vector<1xf32>
    %19 = vector.multi_reduction <add>, %18, %cst_6 [1, 2] : vector<1x64x1xf32> to vector<1xf32>
    %20 = vector.shape_cast %19 : vector<1xf32> to vector<1x1x1xf32>
    %21 = vector.extract %20[0, 0, 0] : f32 from vector<1x1x1xf32>
    %22 = arith.addf %17, %21 : f32
    %c0_7 = arith.constant 0 : index
    %23 = memref.load %arg7[%c0_7] : memref<1xf32, #tpu.memory_space<smem>>
    memref.store %22, %arg7[%c0_7] : memref<1xf32, #tpu.memory_space<smem>>
    %cst_8 = arith.constant dense<0xFF800000> : vector<256xf32>
    %24 = vector.multi_reduction <maximumf>, %7, %cst_8 [0] : vector<64x256xf32> to vector<256xf32>
    %25 = vector.shape_cast %24 : vector<256xf32> to vector<1x256xf32>
    %c0_9 = arith.constant 0 : index
    %c0_10 = arith.constant 0 : index
    %26 = vector.load %arg5[%c0_9, %c0_10] : memref<1x256xf32, #tpu.memory_space<vmem>>, vector<1x256xf32>
    %27 = arith.maximumf %26, %25 : vector<1x256xf32>
    %c0_11 = arith.constant 0 : index
    %c0_12 = arith.constant 0 : index
    %28 = vector.load %arg5[%c0_11, %c0_12] : memref<1x256xf32, #tpu.memory_space<vmem>>, vector<1x256xf32>
    %29 = arith.subf %28, %27 : vector<1x256xf32>
    %30 = math.exp %29 : vector<1x256xf32>
    %31 = vector.broadcast %27 : vector<1x256xf32> to vector<64x256xf32>
    %32 = arith.subf %7, %31 : vector<64x256xf32>
    %33 = math.exp %32 : vector<64x256xf32>
    %c0_13 = arith.constant 0 : index
    %c0_14 = arith.constant 0 : index
    %34 = vector.load %arg6[%c0_13, %c0_14] : memref<1x256xf32, #tpu.memory_space<vmem>>, vector<1x256xf32>
    %35 = arith.mulf %34, %30 : vector<1x256xf32>
    %cst_15 = arith.constant dense<0.000000e+00> : vector<256xf32>
    %36 = vector.multi_reduction <add>, %33, %cst_15 [0] : vector<64x256xf32> to vector<256xf32>
    %37 = vector.shape_cast %36 : vector<256xf32> to vector<1x256xf32>
    %38 = arith.addf %35, %37 : vector<1x256xf32>
    %c0_16 = arith.constant 0 : index
    %c0_17 = arith.constant 0 : index
    %39 = vector.load %arg6[%c0_16, %c0_17] : memref<1x256xf32, #tpu.memory_space<vmem>>, vector<1x256xf32>
    tpu.vector_store %arg6[%c0_16, %c0_17], %38 {strides = array<i32>} : memref<1x256xf32, #tpu.memory_space<vmem>>, vector<1x256xf32>,
    %c0_18 = arith.constant 0 : index
    %c0_19 = arith.constant 0 : index
    %40 = vector.load %arg5[%c0_18, %c0_19] : memref<1x256xf32, #tpu.memory_space<vmem>>, vector<1x256xf32>
    tpu.vector_store %arg5[%c0_18, %c0_19], %27 {strides = array<i32>} : memref<1x256xf32, #tpu.memory_space<vmem>>, vector<1x256xf32>,
    %c3_i32 = arith.constant 3 : i32
    %41 = arith.cmpi eq, %arg0, %c3_i32 : i32
    %42 = arith.extui %41 : i1 to i32
    %c0_i32_20 = arith.constant 0 : i32
    %43 = arith.cmpi ne, %42, %c0_i32_20 : i32
    scf.if %43 {
      %c0_21 = arith.constant 0 : index
      %c0_22 = arith.constant 0 : index
      %44 = vector.load %arg5[%c0_21, %c0_22] : memref<1x256xf32, #tpu.memory_space<vmem>>, vector<1x256xf32>
      %c0_23 = arith.constant 0 : index
      %c0_24 = arith.constant 0 : index
      %45 = vector.load %arg6[%c0_23, %c0_24] : memref<1x256xf32, #tpu.memory_space<vmem>>, vector<1x256xf32>
      %46 = math.log %45 : vector<1x256xf32>
      %47 = arith.addf %44, %46 : vector<1x256xf32>
      %48 = vector.shape_cast %47 : vector<1x256xf32> to vector<1x1x256xf32>
      %cst_25 = arith.constant dense<0.000000e+00> : vector<1xf32>
      %49 = vector.multi_reduction <add>, %48, %cst_25 [1, 2] : vector<1x1x256xf32> to vector<1xf32>
      %50 = vector.shape_cast %49 : vector<1xf32> to vector<1x1x1xf32>
      %51 = vector.extract %50[0, 0, 0] : f32 from vector<1x1x1xf32>
      %c0_26 = arith.constant 0 : index
      %c0_27 = arith.constant 0 : index
      %52 = vector.load %arg2[%c0_26, %c0_27] : memref<1x256xf32, #tpu.memory_space<vmem>>, vector<1x256xf32>
      %53 = vector.shape_cast %52 : vector<1x256xf32> to vector<1x1x256xf32>
      %cst_28 = arith.constant dense<0.000000e+00> : vector<1xf32>
      %54 = vector.multi_reduction <add>, %53, %cst_28 [1, 2] : vector<1x1x256xf32> to vector<1xf32>
      %55 = vector.shape_cast %54 : vector<1xf32> to vector<1x1x1xf32>
      %56 = vector.extract %55[0, 0, 0] : f32 from vector<1x1x1xf32>
      %57 = arith.mulf %4, %56 : f32
      %c0_29 = arith.constant 0 : index
      %58 = memref.load %arg7[%c0_29] : memref<1xf32, #tpu.memory_space<smem>>
      %59 = arith.addf %58, %51 : f32
      %cst_30 = arith.constant 2.000000e+00 : f32
      %60 = arith.mulf %cst_30, %57 : f32
      %61 = arith.subf %59, %60 : f32
      %cst_31 = arith.constant 0.001953125 : f32
      %62 = arith.mulf %61, %cst_31 : f32
      %c0_32 = arith.constant 0 : index
      %c0_33 = arith.constant 0 : index
      %63 = memref.load %arg4[%c0_32, %c0_33] : memref<1x1xf32, #tpu.memory_space<smem>>
      memref.store %62, %arg4[%c0_32, %c0_33] : memref<1x1xf32, #tpu.memory_space<smem>>
    } else {
    }
    return
  }
  func.func @transform_0(%arg0: i32) -> (i32, i32) {
    %c0_i32 = arith.constant 0 : i32
    %c0_i32_0 = arith.constant 0 : i32
    %c0_i32_1 = arith.constant 0 : i32
    return %c0_i32, %c0_i32_0 : i32, i32
  }
  func.func @transform_1(%arg0: i32) -> (i32, i32) {
    %c0_i32 = arith.constant 0 : i32
    %c0_i32_0 = arith.constant 0 : i32
    %c0_i32_1 = arith.constant 0 : i32
    return %c0_i32, %c0_i32_0 : i32, i32
  }
  func.func @transform_2(%arg0: i32) -> (i32, i32) {
    %c0_i32 = arith.constant 0 : i32
    %c0_i32_0 = arith.constant 0 : i32
    return %arg0, %c0_i32 : i32, i32
  }
  func.func @transform_3(%arg0: i32) -> (i32, i32) {
    %c0_i32 = arith.constant 0 : i32
    %c0_i32_0 = arith.constant 0 : i32
    %c0_i32_1 = arith.constant 0 : i32
    return %c0_i32, %c0_i32_0 : i32, i32
  }
}

</mosaic_0001>

<bundles_post_ra>
// kernel: tpu_custom_call.1
= control target key start
LH: loop header
LB: loop body
LE: loop exit
PB: predicated region body
PF: predicated region fallthrough
CT: control target
= control target key end

     0   :  { %s1258_s0 = inlined_call_operand.<no memory space> [shape: f32[1,1], index: 0, kind: input, shape index: {}]   ;;  %s1259_s1 = inlined_call_operand.vmem [shape: f32[1,256], index: 1, kind: input, shape index: {}]   ;;  %s1260_s2 = inlined_call_operand.hbm [shape: f32[256,256], index: 2, kind: input, shape index: {}]   ;;  %s1261_s3 = inlined_call_operand.hbm [shape: f32[1,1], index: 3, kind: output, shape index: {}]  }
   0x1   :  { %8 = sst [smem:[#allocation5]] %s1258_s0 }
   0x2   :  { %9 = vsyncpa [#allocation7], 0 }
   0x3   :  { %11 = vsyncpa [#allocation7 + $0x1], 0 }
   0x4   :  { %12 = vsyncpa [#allocation8], 0  ;;  %s937_s14 = smov 0   ;;  %s939_s15 = smov 0  }
   0x5   :  { %s941_s16 = smov 0   ;;  %s943_s17 = smov 0  }
   0x6 LB: > { %s956_s0 = sadd.s32 4294967295, %s904_s17   ;;  %s959_s18 = sadd.s32 1, %s904_s17   ;;  %s904_s17 = sphi %s943_s17, %s1270_s17   ;;  %s900_s16 = sphi %s941_s16, %s1269_s16   ;;  %s896_s15 = sphi %s939_s15, %s1268_s15   ;;  %s892_s14 = sphi %s937_s14, %s1267_s14  }
   0x7   : > { %s64_s19 = ssub.s32 %s904_s17, %s959_s18  ;;  %s67_s20 = sadd.s32 1, %s900_s16 }
   0x8   : > { %p65_p0 = scmp.eq.s32.totalorder %s64_s19, 0  ;;  %p74_p1 = scmp.ne.s32.totalorder %s900_s16, %s896_s15 }
   0x9   : > { %p75_p2 = scmp.eq.s32.totalorder %s904_s17, 0  ;;  %p80_p3 = scmp.ne.s32.totalorder %s896_s15, %s892_s14 }
   0xa   : > { %s969_s21 = scalar_select %p65_p0, %s900_s16, %s67_s20  }
   0xb   : > { %p76_p4 = por %p75_p2, %p74_p1  ;;  %p81_p5 = scmp.eq.s32.totalorder %s956_s0, 0 }
   0xc   : > { %p696_p6 = scmp.lt.s32.totalorder %s904_s17, 4  ;;  %s131_s23 = sand.u32 1, %s900_s16  }
   0xd   : > { %p973_p7 = por %p81_p5, %p80_p3  ;;  %s664_s24 = sshll.u32 %s131_s23, 7 }
   0xe   : > { %s677_s25 = sshll.u32 %s904_s17, 11  ;;  %s135_s29 = scalar_lea.vmem [#allocation6], %s664_s24 }
   0xf   : > { %s982_s28 = scalar_lea.hbm %s1260_s2, %s677_s25  ;;  %s143_s30 = sshll.u32 %s135_s29, 4  ;;  %s984_s30 = int_to_ptr.vmem [resolvable:$true] %s143_s30 }
  0x10   : > { %p986_p8 = pnand %p696_p6, %p76_p4  ;;  %s991_s5 = scalar_lea.sflag [#allocation7], %s131_s23 }
  0x11   : > { %s824_s6 = scalar_lea.hbm %s982_s28, 2048  ;;  %s829_s9 = scalar_lea.hbm %s1260_s2, 8192 }
  0x12   : > { %p825_p10 = scmp.ne.s32.totalorder %s982_s28, %s824_s6  ;;  %p826_p11 = pneg %p986_p8 }
  0x13   : > { %p830_p0 = scmp.lt.u32.totalorder %s982_s28, %s1260_s2  ;;  %p831_p1 = scmp.lt.u32.totalorder %s829_s9, %s824_s6 }
  0x14   : > { %p827_p12 = pnand %p826_p11, %p825_p10  ;;  %p833_p3 = scmp.lt.u32.totalorder %s824_s6, %s982_s28 }
  0x15   : > { %p832_p2 = por %p831_p1, %p830_p0 }
  0x16   : > { %p828_p13 = pneg %p827_p12 }
  0x17   : > { %p834_p4 = por %p833_p3, %p832_p2 }
  0x19   : > { %p835_p5 = pnand %p834_p4, %p828_p13 }
  0x1b   : > { %838 = shalt.err (!%p835_p5)
}
  0x1c   : > { %s839_s12 = scalar_lea.vmem %s984_s30, 2048  ;;  %s906_s13 = smov [#allocation6]  }
  0x1d   : > { %p840_p6 = scmp.ne.s32.totalorder %s984_s30, %s839_s12  ;;  %s844_s14 = sshll.u32 %s906_s13, 4  ;;  %s845_s14 = int_to_ptr.vmem [resolvable:$false] %s844_s14 }
  0x1e   : > { %s846_s19 = scalar_lea.vmem %s845_s14, 4096  ;;  %p847_p9 = scmp.lt.s32.totalorder %s984_s30, %s845_s14 }
  0x1f   : > { %p842_p10 = pnand %p840_p6, %p826_p11  ;;  %p848_p0 = scmp.lt.s32.totalorder %s846_s19, %s839_s12 }
  0x21   : > { %p843_p12 = pneg %p842_p10  ;;  %p849_p1 = por %p848_p0, %p847_p9 }
  0x23   : > { %p850_p2 = pnand %p849_p1, %p843_p12 }
  0x25   : > { %853 = shalt.err (!%p850_p2)
}
  0x26   : > { %s907_s20 = smov 256   ;;  %s908_s23 = smov 16  }
  0x27   : > { %695 = dma.hbm_to_vmem [thread:$0]  (!%p986_p8), %s982_s28, 2048, %s984_s30, %s991_s5, %s907_s20, %s907_s20, %s908_s23  }
  0x28   : > { %p151_p11 = scmp.lt.s32.totalorder %s904_s17, 5  ;;  %p1264_p13 = scmp.ge.s32.totalorder %s904_s17, 1 }
  0x2a   : > { %p152_p3 = pnand %p1264_p13, %p151_p11 }
  0x2b   : > { %s157_s24 = sand.u32 (!%p152_p3), 1, %s896_s15  }
  0x2c   : > { %155 = sbr.rel (%p152_p3) target bundleno = 721 (0x2d1), region = 32  ;;  %s669_s25 = sshll.u32 (!%p152_p3), %s157_s24, 7 }
  0x2d   : > { %s158_s26 = scalar_lea.sflag (!%p152_p3), [#allocation7], %s157_s24  ;;  %s1023_s27 = scalar_lea.vmem (!%p152_p3), [#allocation6], %s669_s25 }
  0x33   : > { %883 = dma.done.wait (%p973_p7), %s158_s26, 2048  }
  0x34   : > { %885 = vsyncadd (%p973_p7), %s158_s26, 4294965248  ;;  %p670_p9 = scmp.ne.s32.totalorder %s956_s0, 0 }
  0x35   : > { %v184_v0 = vlaneseq (!%p670_p9)  ;;  %s909_s28 = smov (!%p670_p9), 0.0   ;;  %v910_v1 = vmov (!%p670_p9), -inf   ;;  %v911_v2 = vmov (!%p670_p9), 0.0  }
  0x36   : > { %183 = sbr.rel (%p670_p9) target bundleno = 61 (0x3d), region = 40  ;;  %191 = sst [smem:[#allocation4]] (!%p670_p9), %s909_s28 }
  0x37   : > { %vm186_vm0 = vcmp.lt.s32.totalorder (!%p670_p9), %v184_v0, 256 }
  0x38   : > { %188 = vst.msk [vmem:[#allocation2] sm:$0x3] (!%p670_p9), %vm186_vm0, %v910_v1  ;;  %189 = vst.msk [vmem:[#allocation3] sm:$0x3] (!%p670_p9), %vm186_vm0, %v911_v2 }
  0x3d PF: > { %s192_s17 = sld [smem:[#allocation5]]  ;;  %v201_v6 = vld [vmem:[%s1023_s27 + $0x20] sm:$0xff]  ;;  %v202_v7 = vld [vmem:[%s1023_s27 + $0x28] sm:$0xff]  ;;  %v203_v10 = vld [vmem:[%s1023_s27 + $0x30] sm:$0xff]  ;;  %v912_v1 = vmov 1966171168  }
  0x3e   : > { %v197_v8 = vld [vmem:[%s1023_s27] sm:$0xff]  ;;  %v198_v9 = vld [vmem:[%s1023_s27 + $0x8] sm:$0xff]  ;;  %v204_v11 = vld [vmem:[%s1023_s27 + $0x38] sm:$0xff]  ;;  %v410_v2 = vunpack.c.l.s4 %v912_v1  ;;  %vm351_vm2 = vcmask 7168   ;;  %s350_s29 = sld [smem:[#allocation4]]  ;;  %p671_p7 = scmp.ne.s32.totalorder %s956_s0, 3 }
  0x3f   : > { %v199_v12 = vld [vmem:[%s1023_s27 + $0x10] sm:$0xff]  ;;  %v200_v13 = vld [vmem:[%s1023_s27 + $0x18] sm:$0xff]  ;;  %v205_v25 = vld [vmem:[%s1023_s27 + $0x40] sm:$0xff]  ;;  %vm560_vm3 = vcmask (!%p671_p7), 1040384  }
  0x40   : > { %v207_v23 = vld [vmem:[%s1023_s27 + $0x50] sm:$0xff]  ;;  %v208_v24 = vld [vmem:[%s1023_s27 + $0x58] sm:$0xff]  ;;  %v206_v29 = vld [vmem:[%s1023_s27 + $0x48] sm:$0xff] }
  0x41   : > { %v211_v30 = vld [vmem:[%s1023_s27 + $0x70] sm:$0xff]  ;;  %v212_v31 = vld [vmem:[%s1023_s27 + $0x78] sm:$0xff]  ;;  %v209_v36 = vld [vmem:[%s1023_s27 + $0x60] sm:$0xff] }
  0x42   : > { %v210_v40 = vld [vmem:[%s1023_s27 + $0x68] sm:$0xff] }
  0x43   : > { %v193_v3 = vstv %s192_s17 }
  0x44   : > { %v194_v4 = vmul.f32 1.442695, %v193_v3  ;;  %v412_v3 = vlaneseq }
  0x46   : > { %738 = vpow2.f32 %v194_v4  ;;  %vm1123_vm1 = vcmp.lt.s32.totalorder %v412_v3, 256 }
  0x50   : > { %v739_v5 = vpop.eup %738 }
  0x51   : > { %678 = vpush %v739_v5 }
  0x82   : > { %s1035_s22 = spop %678 }
  0x83   : > { %v213_v14 = vstv %s1035_s22 }
  0x84   : > { %v1041_v15 = vmul.f32 %v213_v14, %v201_v6  ;;  %v1043_v16 = vmul.f32 %v213_v14, %v202_v7  ;;  %v1045_v17 = vmul.f32 %v213_v14, %v197_v8  ;;  %v1047_v18 = vmul.f32 %v213_v14, %v198_v9 }
  0x85   : > { %v1049_v19 = vmul.f32 %v213_v14, %v203_v10  ;;  %v1051_v20 = vmul.f32 %v213_v14, %v204_v11  ;;  %v1053_v21 = vmul.f32 %v213_v14, %v199_v12  ;;  %v1055_v22 = vmul.f32 %v213_v14, %v200_v13 }
  0x86   : > { %v236_v26 = vmax.f32 %v1041_v15, %v1043_v16  ;;  %v230_v27 = vmax.f32 %v1045_v17, %v1047_v18  ;;  %v379_v28 = vmax.f32 %v1045_v17, %v1041_v15  ;;  %v392_v32 = vmax.f32 %v1047_v18, %v1043_v16 }
  0x87   : > { %v239_v33 = vmax.f32 %v1049_v19, %v1051_v20  ;;  %v380_v34 = vmax.f32 %v1053_v21, %v1049_v19  ;;  %v393_v35 = vmax.f32 %v1055_v22, %v1051_v20  ;;  %v1078_v37 = vmul.f32 %v213_v14, %v207_v23 }
  0x88   : > { %237 = vmax.xlane.f32.xlu1 %v236_v26  ;;  %231 = vmax.xlane.f32.xlu0 %v230_v27  ;;  %v1080_v38 = vmul.f32 %v213_v14, %v208_v24  ;;  %v1082_v39 = vmul.f32 %v213_v14, %v205_v25  ;;  %v233_v41 = vmax.f32 %v1053_v21, %v1055_v22  ;;  %v411_v8 = vunpack.c.0.s8 %v410_v2  ;;  %v1116_v25 = vld [vmem:[#allocation2] sm:$0x3] }
  0x89   : > { %v1087_v42 = vmul.f32 %v213_v14, %v206_v29  ;;  %v1089_v43 = vmul.f32 %v213_v14, %v211_v30  ;;  %v1091_v44 = vmul.f32 %v213_v14, %v212_v31  ;;  %v382_v45 = vmax.f32 %v380_v34, %v1078_v37 }
  0x8a   : > { %v395_v46 = vmax.f32 %v393_v35, %v1080_v38  ;;  %v381_v47 = vmax.f32 %v379_v28, %v1082_v39  ;;  %v1096_v48 = vmul.f32 %v213_v14, %v209_v36  ;;  %v1099_v50 = vmul.f32 %v213_v14, %v210_v40 }
  0x8b   : > { %v394_v49 = vmax.f32 %v392_v32, %v1087_v42  ;;  %v384_v51 = vmax.f32 %v382_v45, %v1089_v43  ;;  %v245_v55 = vmax.f32 %v1078_v37, %v1080_v38  ;;  %v242_v56 = vmax.f32 %v1082_v39, %v1087_v42 }
  0x8c   : > { %240 = vmax.xlane.f32.xlu1 %v239_v33  ;;  %234 = vmax.xlane.f32.xlu0 %v233_v41  ;;  %v397_v52 = vmax.f32 %v395_v46, %v1091_v44  ;;  %v383_v53 = vmax.f32 %v381_v47, %v1096_v48  ;;  %v251_v61 = vmax.f32 %v1089_v43, %v1091_v44  ;;  %v413_v9 = vshrl.u32 %v412_v3, 7 }
  0x8d   : > { %v396_v54 = vmax.f32 %v394_v49, %v1099_v50  ;;  %v248_v62 = vmax.f32 %v1096_v48, %v1099_v50 }
  0x8e   : > { %v385_v57 = vmax.f32 %v383_v53, %v384_v51  ;;  %v1113_v14 = vsub.s32 %v411_v8, %v413_v9  ;;  %v1119_v27 = vsub.s32 0, %v413_v9  ;;  %v1121_v28 = vsub.s32 1, %v413_v9 }
  0x8f   : > { %v398_v58 = vmax.f32 %v396_v54, %v397_v52 }
  0x90   : > { %246 = vmax.xlane.f32.xlu1 %v245_v55  ;;  %243 = vmax.xlane.f32.xlu0 %v242_v56  ;;  %v386_v59 = vrot.slane %v385_v57, 4 }
  0x91   : > { %v399_v60 = vrot.slane %v398_v58, 4 }
  0x92   : > { %v387_v63 = vmax.f32 %v385_v57, %v386_v59 }
  0x93   : > { %v400_v0 = vmax.f32 %v398_v58, %v399_v60 }
  0x94   : > { %252 = vmax.xlane.f32.xlu1 %v251_v61  ;;  %v388_v4 = vrot.slane %v387_v63, 2  ;;  %249 = vmax.xlane.f32.xlu0 %v248_v62 }
  0x95   : > { %v401_v5 = vrot.slane %v400_v0, 2 }
  0x96   : > { %v389_v6 = vmax.f32 %v387_v63, %v388_v4 }
  0x97   : > { %v402_v7 = vmax.f32 %v400_v0, %v401_v5 }
  0x98   : > { %v390_v10 = vrot.slane %v389_v6, 1 }
  0x99   : > { %v403_v11 = vrot.slane %v402_v7, 1 }
  0x9a   : > { %v391_v12 = vmax.f32 %v389_v6, %v390_v10 }
  0x9b   : > { %v404_v13 = vmax.f32 %v402_v7, %v403_v11 }
  0x9d   : > { %v408_v23 = vcombine.low %v391_v12, %v404_v13 }
  0x9f   : > { %v415_v24 = vrot.slane %v408_v23, %v1113_v14 }
  0xa1   : > { %v422_v26 = vrot.slane %v415_v24, %v1113_v14 }
  0xa3   : > { %v1128_v30 = vmax.f32 %v1116_v25, %v422_v26 }
  0xa5   : > { %v432_v31 = vrot.slane %v1128_v30, %v1119_v27  ;;  %v436_v32 = vrot.slane %v1128_v30, %v1121_v28  ;;  %539 = vst.msk [vmem:[#allocation2] sm:$0x3] %vm1123_vm1, %v1128_v30 }
  0xa7   : > { %v439_v33 = vsub.f32 %v1045_v17, %v432_v31  ;;  %v440_v34 = vsub.f32 %v1047_v18, %v436_v32  ;;  %v441_v35 = vsub.f32 %v1053_v21, %v432_v31  ;;  %v442_v36 = vsub.f32 %v1055_v22, %v436_v32 }
  0xa8   : > { %v443_v40 = vsub.f32 %v1041_v15, %v432_v31  ;;  %v444_v41 = vsub.f32 %v1043_v16, %v436_v32  ;;  %v445_v45 = vsub.f32 %v1049_v19, %v432_v31  ;;  %v446_v49 = vsub.f32 %v1051_v20, %v436_v32 }
  0xa9   : > { %v455_v46 = vmul.f32 1.442695, %v439_v33  ;;  %v457_v47 = vmul.f32 1.442695, %v440_v34  ;;  %v459_v51 = vmul.f32 1.442695, %v441_v35  ;;  %v447_v53 = vsub.f32 %v1082_v39, %v432_v31 }
  0xaa   : > { %v461_v52 = vmul.f32 1.442695, %v442_v36  ;;  %v463_v54 = vmul.f32 1.442695, %v443_v40  ;;  %v448_v55 = vsub.f32 %v1087_v42, %v436_v32  ;;  %v465_v56 = vmul.f32 1.442695, %v444_v41 }
  0xab   : > { %740 = vpow2.f32 %v455_v46  ;;  %v449_v57 = vsub.f32 %v1078_v37, %v432_v31  ;;  %v467_v58 = vmul.f32 1.442695, %v445_v45  ;;  %v450_v59 = vsub.f32 %v1080_v38, %v436_v32 }
  0xac   : > { %742 = vpow2.f32 %v457_v47  ;;  %v469_v60 = vmul.f32 1.442695, %v446_v49  ;;  %v451_v61 = vsub.f32 %v1096_v48, %v432_v31  ;;  %v471_v62 = vmul.f32 1.442695, %v447_v53 }
  0xad   : > { %744 = vpow2.f32 %v459_v51  ;;  %v452_v63 = vsub.f32 %v1099_v50, %v436_v32  ;;  %v473_v0 = vmul.f32 1.442695, %v448_v55  ;;  %v453_v1 = vsub.f32 %v1089_v43, %v432_v31 }
  0xae   : > { %746 = vpow2.f32 %v461_v52  ;;  %v475_v2 = vmul.f32 1.442695, %v449_v57  ;;  %v454_v3 = vsub.f32 %v1091_v44, %v436_v32  ;;  %v477_v4 = vmul.f32 1.442695, %v450_v59 }
  0xaf   : > { %748 = vpow2.f32 %v463_v54  ;;  %v479_v5 = vmul.f32 1.442695, %v451_v61  ;;  %v481_v6 = vmul.f32 1.442695, %v452_v63  ;;  %v483_v8 = vmul.f32 1.442695, %v453_v1 }
  0xb0   : > { %750 = vpow2.f32 %v465_v56  ;;  %v485_v10 = vmul.f32 1.442695, %v454_v3  ;;  %v425_v55 = vsub.f32 %v1116_v25, %v1128_v30 }
  0xb1   : > { %752 = vpow2.f32 %v467_v58 }
  0xb2   : > { %754 = vpow2.f32 %v469_v60 }
  0xb3   : > { %756 = vpow2.f32 %v471_v62  ;;  %v426_v62 = vmul.f32 1.442695, %v425_v55 }
  0xb4   : > { %758 = vpow2.f32 %v473_v0 }
  0xb5   : > { %v741_v7 = vpop.eup %740  ;;  %760 = vpow2.f32 %v475_v2 }
  0xb6   : > { %v743_v9 = vpop.eup %742  ;;  %762 = vpow2.f32 %v477_v4 }
  0xb7   : > { %v745_v11 = vpop.eup %744  ;;  %764 = vpow2.f32 %v479_v5 }
  0xb8   : > { %v747_v12 = vpop.eup %746  ;;  %766 = vpow2.f32 %v481_v6  ;;  %v489_v13 = vadd.f32 %v745_v11, %v741_v7  ;;  %v487_v11 = vld [vmem:[#allocation3] sm:$0x3] }
  0xb9   : > { %v749_v23 = vpop.eup %748  ;;  %768 = vpow2.f32 %v483_v8  ;;  %v502_v24 = vadd.f32 %v747_v12, %v743_v9 }
  0xba   : > { %v751_v26 = vpop.eup %750  ;;  %770 = vpow2.f32 %v485_v10  ;;  %v490_v31 = vadd.f32 %v749_v23, %v489_v13 }
  0xbb   : > { %v753_v32 = vpop.eup %752  ;;  %v503_v33 = vadd.f32 %v751_v26, %v502_v24  ;;  %772 = vpow2.f32 %v426_v62 }
  0xbc   : > { %v755_v34 = vpop.eup %754  ;;  %v491_v35 = vadd.f32 %v753_v32, %v490_v31 }
  0xbd   : > { %v757_v36 = vpop.eup %756  ;;  %v504_v40 = vadd.f32 %v755_v34, %v503_v33 }
  0xbe   : > { %v759_v41 = vpop.eup %758  ;;  %v492_v45 = vadd.f32 %v757_v36, %v491_v35 }
  0xbf   : > { %v761_v46 = vpop.eup %760  ;;  %v505_v47 = vadd.f32 %v759_v41, %v504_v40 }
  0xc0   : > { %v763_v49 = vpop.eup %762  ;;  %v493_v51 = vadd.f32 %v761_v46, %v492_v45 }
  0xc1   : > { %v765_v52 = vpop.eup %764  ;;  %v506_v53 = vadd.f32 %v763_v49, %v505_v47 }
  0xc2   : > { %v767_v54 = vpop.eup %766  ;;  %v494_v56 = vadd.f32 %v765_v52, %v493_v51 }
  0xc3   : > { %v769_v57 = vpop.eup %768  ;;  %v507_v58 = vadd.f32 %v767_v54, %v506_v53 }
  0xc4   : > { %v771_v59 = vpop.eup %770  ;;  %v495_v60 = vadd.f32 %v769_v57, %v494_v56 }
  0xc5   : > { %v508_v61 = vadd.f32 %v771_v59, %v507_v58  ;;  %v773_v10 = vpop.eup %772 }
  0xc6   : > { %v496_v63 = vrot.slane %v495_v60, 4  ;;  %v488_v13 = vmul.f32 %v773_v10, %v487_v11 }
  0xc7   : > { %v509_v0 = vrot.slane %v508_v61, 4 }
  0xc8   : > { %v497_v1 = vadd.f32 %v496_v63, %v495_v60 }
  0xc9   : > { %v510_v2 = vadd.f32 %v509_v0, %v508_v61 }
  0xca   : > { %v498_v3 = vrot.slane %v497_v1, 2 }
  0xcb   : > { %v511_v4 = vrot.slane %v510_v2, 2 }
  0xcc   : > { %v499_v5 = vadd.f32 %v498_v3, %v497_v1 }
  0xcd   : > { %v512_v6 = vadd.f32 %v511_v4, %v510_v2 }
  0xce   : > { %v500_v7 = vrot.slane %v499_v5, 1 }
  0xcf   : > { %v513_v8 = vrot.slane %v512_v6, 1 }
  0xd0   : > { %v501_v9 = vadd.f32 %v500_v7, %v499_v5 }
  0xd1   : > { %v514_v25 = vadd.f32 %v513_v8, %v512_v6 }
  0xd3   : > { %v517_v30 = vcombine.low %v501_v9, %v514_v25 }
  0xd5   : > { %v524_v12 = vrot.slane %v517_v30, %v1113_v14 }
  0xd7   : > { %v531_v23 = vrot.slane %v524_v12, %v1113_v14 }
  0xd9   : > { %v533_v24 = vadd.f32 %v531_v23, %v488_v13 }
  0xdb   : > { %538 = vst.msk [vmem:[#allocation3] sm:$0x3] %vm1123_vm1, %v533_v24 }
 0x115   : > { %v1159_v26 = vpop.xlane.xlu1 %237  ;;  %v1161_v31 = vpop.xlane.xlu0 %231 }
 0x116   : > { %v258_v32 = vsub.f32 %v1041_v15, %v1159_v26  ;;  %v254_v33 = vsub.f32 %v1045_v17, %v1161_v31  ;;  %v255_v34 = vsub.f32 %v1047_v18, %v1161_v31  ;;  %v259_v14 = vsub.f32 %v1043_v16, %v1159_v26 }
 0x118   : > { %v270_v35 = vmul.f32 1.442695, %v254_v33  ;;  %v272_v36 = vmul.f32 1.442695, %v255_v34  ;;  %v278_v41 = vmul.f32 1.442695, %v258_v32 }
 0x119   : > { %v1171_v29 = vpop.xlane.xlu1 %240  ;;  %v1173_v40 = vpop.xlane.xlu0 %234  ;;  %v280_v17 = vmul.f32 1.442695, %v259_v14 }
 0x11a   : > { %v260_v45 = vsub.f32 %v1049_v19, %v1171_v29  ;;  %v256_v15 = vsub.f32 %v1053_v21, %v1173_v40  ;;  %v261_v18 = vsub.f32 %v1051_v20, %v1171_v29  ;;  %v257_v16 = vsub.f32 %v1055_v22, %v1173_v40 }
 0x11b   : > { %774 = vpow2.f32 %v270_v35 }
 0x11c   : > { %v274_v46 = vmul.f32 1.442695, %v256_v15  ;;  %776 = vpow2.f32 %v272_v36  ;;  %v276_v47 = vmul.f32 1.442695, %v257_v16  ;;  %v282_v19 = vmul.f32 1.442695, %v260_v45 }
 0x11d   : > { %v1183_v49 = vpop.xlane.xlu1 %246  ;;  %v1185_v51 = vpop.xlane.xlu0 %243  ;;  %778 = vpow2.f32 %v278_v41  ;;  %v284_v20 = vmul.f32 1.442695, %v261_v18 }
 0x11e   : > { %v264_v21 = vsub.f32 %v1078_v37, %v1183_v49  ;;  %v262_v52 = vsub.f32 %v1082_v39, %v1185_v51  ;;  %780 = vpow2.f32 %v280_v17  ;;  %v265_v22 = vsub.f32 %v1080_v38, %v1183_v49 }
 0x11f   : > { %v263_v53 = vsub.f32 %v1087_v42, %v1185_v51  ;;  %782 = vpow2.f32 %v274_v46 }
 0x120   : > { %v286_v54 = vmul.f32 1.442695, %v262_v52  ;;  %784 = vpow2.f32 %v276_v47  ;;  %v290_v37 = vmul.f32 1.442695, %v264_v21  ;;  %v292_v38 = vmul.f32 1.442695, %v265_v22 }
 0x121   : > { %v288_v55 = vmul.f32 1.442695, %v263_v53  ;;  %v1195_v56 = vpop.xlane.xlu1 %252  ;;  %v1197_v57 = vpop.xlane.xlu0 %249  ;;  %786 = vpow2.f32 %v282_v19 }
 0x122   : > { %v268_v39 = vsub.f32 %v1089_v43, %v1195_v56  ;;  %v266_v58 = vsub.f32 %v1096_v48, %v1197_v57  ;;  %788 = vpow2.f32 %v284_v20  ;;  %v269_v42 = vsub.f32 %v1091_v44, %v1195_v56 }
 0x123   : > { %v267_v59 = vsub.f32 %v1099_v50, %v1197_v57  ;;  %790 = vpow2.f32 %v286_v54 }
 0x124   : > { %v294_v60 = vmul.f32 1.442695, %v266_v58  ;;  %792 = vpow2.f32 %v288_v55  ;;  %v298_v63 = vmul.f32 1.442695, %v268_v39  ;;  %v300_v43 = vmul.f32 1.442695, %v269_v42 }
 0x125   : > { %v296_v61 = vmul.f32 1.442695, %v267_v59  ;;  %v775_v62 = vpop.eup %774  ;;  %794 = vpow2.f32 %v290_v37 }
 0x126   : > { %v777_v0 = vpop.eup %776  ;;  %796 = vpow2.f32 %v292_v38 }
 0x127   : > { %v779_v1 = vpop.eup %778  ;;  %798 = vpow2.f32 %v294_v60  ;;  %v302_v48 = vadd.f32 %v777_v0, %v775_v62 }
 0x128   : > { %v781_v2 = vpop.eup %780  ;;  %800 = vpow2.f32 %v296_v61 }
 0x129   : > { %v783_v3 = vpop.eup %782  ;;  %802 = vpow2.f32 %v298_v63  ;;  %303 = vadd.xlane.f32.xlu0 %v302_v48  ;;  %v308_v4 = vadd.f32 %v781_v2, %v779_v1 }
 0x12a   : > { %v785_v44 = vpop.eup %784  ;;  %804 = vpow2.f32 %v300_v43 }
 0x12b   : > { %v787_v50 = vpop.eup %786  ;;  %v305_v5 = vadd.f32 %v785_v44, %v783_v3 }
 0x12c   : > { %v789_v6 = vpop.eup %788 }
 0x12d   : > { %v791_v7 = vpop.eup %790  ;;  %309 = vadd.xlane.f32.xlu0 %v308_v4  ;;  %306 = vadd.xlane.f32.xlu1 %v305_v5  ;;  %v311_v25 = vadd.f32 %v789_v6, %v787_v50 }
 0x12e   : > { %v793_v8 = vpop.eup %792 }
 0x12f   : > { %v795_v9 = vpop.eup %794  ;;  %v314_v30 = vadd.f32 %v793_v8, %v791_v7 }
 0x130   : > { %v797_v10 = vpop.eup %796 }
 0x131   : > { %v799_v11 = vpop.eup %798  ;;  %312 = vadd.xlane.f32.xlu1 %v311_v25  ;;  %315 = vadd.xlane.f32.xlu0 %v314_v30  ;;  %v317_v23 = vadd.f32 %v797_v10, %v795_v9 }
 0x132   : > { %v801_v12 = vpop.eup %800 }
 0x133   : > { %v803_v13 = vpop.eup %802  ;;  %v320_v24 = vadd.f32 %v801_v12, %v799_v11  ;;  %v544_v12 = vld [vmem:[#allocation2] sm:$0x3] (!%p671_p7) }
 0x134   : > { %v805_v32 = vpop.eup %804 }
 0x135   : > { %318 = vadd.xlane.f32.xlu1 %v317_v23  ;;  %321 = vadd.xlane.f32.xlu0 %v320_v24  ;;  %v323_v33 = vadd.f32 %v805_v32, %v803_v13  ;;  %v573_v13 = vld [vmem:[%s1259_s1] sm:$0x3] (!%p671_p7) }
 0x136   : > { %v578_v32 = vrot.slane (!%p671_p7), %v573_v13, %v1119_v27 }
 0x139   : > { %324 = vadd.xlane.f32.xlu1 %v323_v33  ;;  %v582_v33 = vrot.slane (!%p671_p7), %v573_v13, %v1121_v28 }
 0x1b6   : > { %v304_v34 = vpop.xlane.xlu0 %303 }
 0x1b7   : > { %806 = vlog2.f32 %v304_v34 }
 0x1ba   : > { %v307_v14 = vpop.xlane.xlu1 %306  ;;  %v310_v35 = vpop.xlane.xlu0 %309 }
 0x1bb   : > { %808 = vlog2.f32 %v307_v14 }
 0x1bc   : > { %810 = vlog2.f32 %v310_v35 }
 0x1be   : > { %v313_v36 = vpop.xlane.xlu1 %312  ;;  %v316_v41 = vpop.xlane.xlu0 %315 }
 0x1bf   : > { %812 = vlog2.f32 %v313_v36 }
 0x1c0   : > { %814 = vlog2.f32 %v316_v41  ;;  %v585_v41 = vsel (!%p671_p7), %vm560_vm3, %v578_v32, 0.0 }
 0x1c1   : > { %v807_v45 = vpop.eup %806 }
 0x1c2   : > { %v327_v15 = vmul.f32 0.6931472, %v807_v45  ;;  %v319_v17 = vpop.xlane.xlu1 %318  ;;  %v322_v18 = vpop.xlane.xlu0 %321  ;;  %v586_v45 = vsel (!%p671_p7), %vm560_vm3, %v582_v33, 0.0 }
 0x1c3   : > { %816 = vlog2.f32 %v319_v17  ;;  %v587_v17 = vadd.f32 (!%p671_p7), %v586_v45, %v585_v41 }
 0x1c4   : > { %818 = vlog2.f32 %v322_v18  ;;  %v342_v47 = vadd.f32 %v327_v15, %v1161_v31 }
 0x1c5   : > { %v809_v16 = vpop.eup %808 }
 0x1c6   : > { %v811_v46 = vpop.eup %810  ;;  %v329_v19 = vmul.f32 0.6931472, %v809_v16  ;;  %v325_v21 = vpop.xlane.xlu1 %324  ;;  %v352_v55 = vsel %vm351_vm2, %v342_v47, 0.0 }
 0x1c7   : > { %v331_v52 = vmul.f32 0.6931472, %v811_v46  ;;  %820 = vlog2.f32 %v325_v21 }
 0x1c8   : > { %v343_v20 = vadd.f32 %v329_v19, %v1173_v40 }
 0x1c9   : > { %v813_v22 = vpop.eup %812  ;;  %v344_v53 = vadd.f32 %v331_v52, %v1159_v26 }
 0x1ca   : > { %v815_v54 = vpop.eup %814  ;;  %v353_v37 = vsel %vm351_vm2, %v343_v20, 0.0  ;;  %v333_v39 = vmul.f32 0.6931472, %v813_v22 }
 0x1cb   : > { %v354_v58 = vadd.f32 %v353_v37, %v352_v55  ;;  %v335_v38 = vmul.f32 0.6931472, %v815_v54  ;;  %v355_v31 = vsel %vm351_vm2, %v344_v53, 0.0 }
 0x1cc   : > { %v345_v42 = vadd.f32 %v333_v39, %v1171_v29 }
 0x1cd   : > { %v817_v59 = vpop.eup %816  ;;  %v356_v60 = vadd.f32 %v355_v31, %v354_v58  ;;  %v346_v61 = vadd.f32 %v335_v38, %v1185_v51 }
 0x1ce   : > { %v819_v40 = vpop.eup %818  ;;  %v357_v62 = vsel %vm351_vm2, %v345_v42, 0.0  ;;  %v337_v26 = vmul.f32 0.6931472, %v817_v59 }
 0x1cf   : > { %v358_v63 = vadd.f32 %v357_v62, %v356_v60  ;;  %v339_v0 = vmul.f32 0.6931472, %v819_v40  ;;  %v359_v43 = vsel %vm351_vm2, %v346_v61, 0.0 }
 0x1d0   : > { %v347_v1 = vadd.f32 %v337_v26, %v1183_v49 }
 0x1d1   : > { %v821_v48 = vpop.eup %820  ;;  %v348_v2 = vadd.f32 %v339_v0, %v1197_v57  ;;  %v360_v3 = vadd.f32 %v359_v43, %v358_v63 }
 0x1d2   : > { %v341_v44 = vmul.f32 0.6931472, %v821_v48  ;;  %v361_v29 = vsel %vm351_vm2, %v347_v1, 0.0 }
 0x1d3   : > { %v362_v50 = vadd.f32 %v361_v29, %v360_v3  ;;  %v363_v4 = vsel %vm351_vm2, %v348_v2, 0.0 }
 0x1d4   : > { %v349_v51 = vadd.f32 %v341_v44, %v1195_v56  ;;  %v545_v56 = vld [vmem:[#allocation3] sm:$0x3] (!%p671_p7) }
 0x1d5   : > { %v364_v5 = vadd.f32 %v363_v4, %v362_v50  ;;  %822 = vlog2.f32 (!%p671_p7), %v545_v56 }
 0x1d6   : > { %v365_v6 = vsel %vm351_vm2, %v349_v51, 0.0 }
 0x1d7   : > { %v366_v7 = vadd.f32 %v365_v6, %v364_v5 }
 0x1d9   : > { %367 = vadd.xlane.f32.xlu0 %v366_v7 }
 0x1df   : > { %v823_v11 = vpop.eup (!%p671_p7), %822 }
 0x1e0   : > { %v547_v23 = vmul.f32 (!%p671_p7), 0.6931472, %v823_v11 }
 0x1e2   : > { %v548_v24 = vadd.f32 (!%p671_p7), %v547_v23, %v544_v12 }
 0x1e4   : > { %v553_v34 = vrot.slane (!%p671_p7), %v548_v24, %v1119_v27  ;;  %v557_v14 = vrot.slane (!%p671_p7), %v548_v24, %v1121_v28 }
 0x1e6   : > { %v561_v35 = vsel (!%p671_p7), %vm560_vm3, %v553_v34, 0.0  ;;  %v562_v36 = vsel (!%p671_p7), %vm560_vm3, %v557_v14, 0.0 }
 0x1e7   : > { %v563_v15 = vadd.f32 (!%p671_p7), %v562_v36, %v561_v35 }
 0x1e9   : > { %564 = vadd.xlane.f32.xlu0 (!%p671_p7), %v563_v15 }
 0x1ed   : > { %588 = vadd.xlane.f32.xlu0 (!%p671_p7), %v587_v17 }
 0x266   : > { %v368_v8 = vpop.xlane.xlu0 %367 }
 0x267   : > { %v369_v9 = vrot.slane %v368_v8, 4 }
 0x269   : > { %v370_v49 = vadd.f32 %v369_v9, %v368_v8 }
 0x26b   : > { %v371_v25 = vrot.slane %v370_v49, 2 }
 0x26d   : > { %v372_v30 = vadd.f32 %v371_v25, %v370_v49 }
 0x26f   : > { %v373_v57 = vrot.slane %v372_v30, 1 }
 0x271   : > { %v374_v10 = vadd.f32 %v373_v57, %v372_v30 }
 0x273   : > { %680 = vpush %v374_v10 }
 0x276   : > { %v565_v18 = vpop.xlane.xlu0 (!%p671_p7), %564 }
 0x277   : > { %v566_v16 = vrot.slane (!%p671_p7), %v565_v18, 4 }
 0x279   : > { %v567_v46 = vadd.f32 (!%p671_p7), %v566_v16, %v565_v18 }
 0x27a   : > { %v589_v47 = vpop.xlane.xlu0 (!%p671_p7), %588 }
 0x27b   : > { %v568_v19 = vrot.slane (!%p671_p7), %v567_v46, 2  ;;  %v590_v21 = vrot.slane (!%p671_p7), %v589_v47, 4 }
 0x27d   : > { %v591_v52 = vadd.f32 (!%p671_p7), %v590_v21, %v589_v47  ;;  %v569_v20 = vadd.f32 (!%p671_p7), %v568_v19, %v567_v46 }
 0x27f   : > { %v592_v27 = vrot.slane (!%p671_p7), %v591_v52, 2  ;;  %v570_v22 = vrot.slane (!%p671_p7), %v569_v20, 1 }
 0x281   : > { %v593_v28 = vadd.f32 (!%p671_p7), %v592_v27, %v591_v52  ;;  %v571_v53 = vadd.f32 (!%p671_p7), %v570_v22, %v569_v20 }
 0x283   : > { %682 = vpush (!%p671_p7), %v571_v53  ;;  %v594_v54 = vrot.slane (!%p671_p7), %v593_v28, 1 }
 0x285   : > { %v595_v55 = vadd.f32 (!%p671_p7), %v594_v54, %v593_v28 }
 0x287   : > { %684 = vpush (!%p671_p7), %v595_v55 }
 0x2a1   : > { %543 = sbr.rel (%p671_p7) target bundleno = 706 (0x2c2), region = 44 }
 0x2a4   : > { %s681_s30 = spop %680 }
 0x2a5   : > { %s376_s4 = sadd.f32 %s681_s30, %s350_s29 }
 0x2a7   : > { %378 = sst [smem:[#allocation4]] %s376_s4 }
 0x2a8   : > { %s598_s7 = sld [smem:[#allocation4]] }
 0x2b4   : > { %s683_s8 = spop %682 }
 0x2b5   : > { %s599_s11 = sadd.f32 %s683_s8, %s598_s7 }
 0x2b8   : > { %s685_s9 = spop %684 }
 0x2b9   : > { %s597_s10 = smul.f32 %s685_s9, %s1035_s22 }
 0x2bb   : > { %s600_s12 = smul.f32 2.0, %s597_s10 }
 0x2bd   : > { %s601_s13 = ssub.f32 %s599_s11, %s600_s12 }
 0x2bf   : > { %s602_s14 = smul.f32 0.001953125, %s601_s13 }
 0x2c1   : > { %604 = sst [smem:[#allocation9]] %s602_s14 }
 0x2c2 PF: > { %p697_p8 = scmp.eq.s32.totalorder %s956_s0, 3  ;;  %s854_s23 = scalar_lea.hbm %s1261_s3, 16 }
 0x2c3   : > { %p855_p4 = scmp.ne.s32.totalorder %s1261_s3, %s854_s23  ;;  %p860_p10 = scmp.lt.u32.totalorder %s854_s23, %s1261_s3 }
 0x2c5   : > { %p856_p5 = pnand %p855_p4, %p697_p8 }
 0x2c7   : > { %p857_p6 = pneg %p856_p5 }
 0x2c9   : > { %p862_p12 = pnand %p860_p10, %p857_p6 }
 0x2cb   : > { %865 = shalt.err (!%p862_p12)
}
 0x2cc   : > { %s913_s28 = smov [#allocation9]  }
 0x2cd   : > { %689 = dma.smem_to_hbm (%p697_p8), %s913_s28, 16, %s1261_s3, [#allocation8]  }
 0x2ce   : > { %887 = dma.done.wait (%p697_p8), [#allocation8], 16  }
 0x2cf   : > { %889 = vsyncadd (%p697_p8), [#allocation8], 4294967280 }
 0x2d0   : > { %618 = sfence }
 0x2d1 PF: > { %p15_p0 = scmp.ge.s32.totalorder %s959_s18, 6   ;;  %s1267_s14 = smov %s896_s15 }
 0x2d2   : > { %s1268_s15 = smov %s900_s16  ;;  %s1269_s16 = smov %s969_s21 }
 0x2d3   : > { %s1270_s17 = smov %s959_s18  ;;  %17 = sbr.rel (!%p15_p0) target bundleno = 6 (0x6), region = 80 }
 0x2da   :  { %624 = vsyncpa [#allocation7], 1 }
 0x2db   :  { %626 = vsyncpa [#allocation7 + $0x1], 1 }
 0x2dc   :  { %627 = vsyncpa [#allocation8], 1 }
 0x2dd   :  { %629 = vsyncpa [#allocation8 + $0x1], 1 }

</bundles_post_ra>
